<compile_context>
chip_gen: v7x
topology: tpu7x:2x2x1
jax: 0.10.0
libtpu: 0.0.40
codegen_flags: <defaults>
</compile_context>

<pallas_src>
import functools

import jax
import jax.numpy as jnp
from jax.experimental import pallas as pl
from jax.experimental.pallas import tpu as pltpu

LANE = 128
_DEFAULT_VMEM_CAP = 64 * 1024 * 1024  # assume the smallest generation (v7x) if query fails


def _round_up(x, m):
    return ((x + m - 1) // m) * m


def _pad2(a, rows, cols):
    return jnp.pad(a, ((0, rows - a.shape[0]), (0, cols - a.shape[1])))


def _vmem_caps():
    """Returns (vmem_limit_bytes to request, resident-A byte budget), generation aware."""
    cap = _DEFAULT_VMEM_CAP
    try:
        cap = int(pltpu.get_tpu_info().vmem_capacity_bytes)
    except Exception:
        pass
    limit = min(int(cap * 0.75), 100 * 1024 * 1024)
    resident_budget = int(cap * 0.45)
    return limit, resident_budget


def _pick_tile(n_pad, prefs):
    for t in prefs:
        if t <= n_pad and n_pad % t == 0:
            return t
    return n_pad


# ---------------------------------------------------------------------------
# Kernels
# ---------------------------------------------------------------------------
def fused_gcn_kernel(a_ref, x_ref, w1_ref, b1_ref, w2_ref, b2_ref,
                     wl_ref, bl_ref, y_ref, *, n_valid):
    """Whole forward with A resident in VMEM (small/medium graphs, one launch)."""
    xw1 = jnp.dot(x_ref[...], w1_ref[...],
                  preferred_element_type=jnp.float32).astype(jnp.bfloat16)
    h1 = jnp.dot(a_ref[...], xw1, preferred_element_type=jnp.float32) + b1_ref[...]
    h1 = jnp.maximum(h1, 0.0).astype(jnp.bfloat16)

    xw2 = jnp.dot(h1, w2_ref[...],
                  preferred_element_type=jnp.float32).astype(jnp.bfloat16)
    h2 = jnp.dot(a_ref[...], xw2, preferred_element_type=jnp.float32)  # bias added below

    # Padded rows of A are all-zero -> padded rows of h2 are zero, so the column
    # sum over the whole (padded) tile equals the sum over valid rows.
    pooled = jnp.sum(h2, axis=0, keepdims=True) * (1.0 / float(n_valid)) + b2_ref[...]
    y_ref[...] = (jnp.dot(pooled, wl_ref[...], preferred_element_type=jnp.float32)
                  + bl_ref[...])


def agg_kernel(a_ref, x_ref, w_ref, b_ref, o_ref, acc_ref, *, tk, relu):
    """o[i] = sum_k A[i,k] @ (X[k] @ W) + b, optional ReLU.

    X and W are VMEM-resident full-array blocks; the projection is recomputed per
    K step (MXU has huge slack under the HBM-bound A stream), so XW never touches
    HBM and is never re-DMA'd per row tile.
    """
    k = pl.program_id(1)

    @pl.when(k == 0)
    def _():
        acc_ref[...] = jnp.zeros_like(acc_ref)

    off = pl.multiple_of(k * tk, tk)
    xw_k = jnp.dot(x_ref[pl.ds(off, tk), :], w_ref[...],
                   preferred_element_type=jnp.float32).astype(jnp.bfloat16)
    acc_ref[...] += jnp.dot(a_ref[...], xw_k, preferred_element_type=jnp.float32)

    @pl.when(k == pl.num_programs(1) - 1)
    def _():
        h = acc_ref[...] + b_ref[...]
        if relu:
            h = jnp.maximum(h, 0.0)
        o_ref[...] = h.astype(o_ref.dtype)


def agg_pool_kernel(a_ref, x_ref, w_ref, b_ref, psum_ref, acc_ref,
                    *, tm, tk, n_valid):
    """Layer-2 aggregation fused with the global-mean-pool partial reduction.

    Emits, per row tile, the column sum of (A @ (X@W) + b) over valid rows,
    replicated across 8 sublanes so the output block is (8, H)-aligned.  H2 never
    leaves VMEM.
    """
    i = pl.program_id(0)
    k = pl.program_id(1)

    @pl.when(k == 0)
    def _():
        acc_ref[...] = jnp.zeros_like(acc_ref)

    off = pl.multiple_of(k * tk, tk)
    xw_k = jnp.dot(x_ref[pl.ds(off, tk), :], w_ref[...],
                   preferred_element_type=jnp.float32).astype(jnp.bfloat16)
    acc_ref[...] += jnp.dot(a_ref[...], xw_k, preferred_element_type=jnp.float32)

    @pl.when(k == pl.num_programs(1) - 1)
    def _():
        # Padded A rows are zero -> the un-biased column sum over all tile rows
        # already equals the valid-row sum; only the bias needs a valid count.
        valid = jnp.clip(n_valid - i * tm, 0, tm).astype(jnp.float32)
        colsum = jnp.sum(acc_ref[...], axis=0, keepdims=True) + valid * b_ref[...]
        psum_ref[...] = jnp.broadcast_to(colsum, psum_ref.shape)


# ---------------------------------------------------------------------------
# pallas_call wrappers
# ---------------------------------------------------------------------------
def _fused_forward(a_p, x_p, w1_p, b1_p, w2_p, b2_p, wl_p, bl_p, n, vmem_limit):
    c_pad = wl_p.shape[1]
    vspec = pl.BlockSpec(memory_space=pltpu.MemorySpace.VMEM)
    return pl.pallas_call(
        functools.partial(fused_gcn_kernel, n_valid=n),
        out_shape=jax.ShapeDtypeStruct((1, c_pad), jnp.float32),
        in_specs=[vspec] * 8,
        out_specs=vspec,
        compiler_params=pltpu.CompilerParams(vmem_limit_bytes=vmem_limit),
    )(a_p, x_p, w1_p, b1_p, w2_p, b2_p, wl_p, bl_p)


def _agg_layer(a_p, x_in, w_p, b_p, tm, tk, *, relu, vmem_limit):
    n_pad = a_p.shape[0]
    f_in = x_in.shape[1]
    h_pad = w_p.shape[1]
    ni = n_pad // tm
    nk = n_pad // tk
    return pl.pallas_call(
        functools.partial(agg_kernel, tk=tk, relu=relu),
        out_shape=jax.ShapeDtypeStruct((n_pad, h_pad), jnp.bfloat16),
        grid_spec=pltpu.PrefetchScalarGridSpec(
            num_scalar_prefetch=0,
            grid=(ni, nk),
            in_specs=[
                pl.BlockSpec((tm, tk), lambda i, k: (i, k)),        # streamed A
                pl.BlockSpec((n_pad, f_in), lambda i, k: (0, 0)),   # resident X
                pl.BlockSpec((f_in, h_pad), lambda i, k: (0, 0)),   # resident W
                pl.BlockSpec((1, h_pad), lambda i, k: (0, 0)),      # bias
            ],
            out_specs=pl.BlockSpec((tm, h_pad), lambda i, k: (i, 0)),
            scratch_shapes=[pltpu.VMEM((tm, h_pad), jnp.float32)],
        ),
        compiler_params=pltpu.CompilerParams(
            dimension_semantics=("parallel", "arbitrary"),
            vmem_limit_bytes=vmem_limit,
        ),
    )(a_p, x_in, w_p, b_p)


def _agg_pool_layer(a_p, x_in, w_p, b_p, tm, tk, n_valid, vmem_limit):
    n_pad = a_p.shape[0]
    f_in = x_in.shape[1]
    h_pad = w_p.shape[1]
    ni = n_pad // tm
    nk = n_pad // tk
    return pl.pallas_call(
        functools.partial(agg_pool_kernel, tm=tm, tk=tk, n_valid=n_valid),
        out_shape=jax.ShapeDtypeStruct((ni * 8, h_pad), jnp.float32),
        grid_spec=pltpu.PrefetchScalarGridSpec(
            num_scalar_prefetch=0,
            grid=(ni, nk),
            in_specs=[
                pl.BlockSpec((tm, tk), lambda i, k: (i, k)),
                pl.BlockSpec((n_pad, f_in), lambda i, k: (0, 0)),
                pl.BlockSpec((f_in, h_pad), lambda i, k: (0, 0)),
                pl.BlockSpec((1, h_pad), lambda i, k: (0, 0)),
            ],
            out_specs=pl.BlockSpec((8, h_pad), lambda i, k: (i, 0)),
            scratch_shapes=[pltpu.VMEM((tm, h_pad), jnp.float32)],
        ),
        compiler_params=pltpu.CompilerParams(
            dimension_semantics=("parallel", "arbitrary"),
            vmem_limit_bytes=vmem_limit,
        ),
    )(a_p, x_in, w_p, b_p)


# ---------------------------------------------------------------------------
# Graph preprocessing (JAX glue) + full forward
# ---------------------------------------------------------------------------
def build_normalized_adjacency_padded(edge_index, num_nodes, n_pad):
    """D^{-1/2}(A+I)D^{-1/2} built directly at padded size; scaling and bf16 cast
    fuse into a single elementwise pass (no extra N^2 pad/copy arrays).

    Parallel edges are summed; self-loops are only added where missing
    (add_remaining_self_loops).  Assumes edge_index is symmetric (both directions
    present), matching PyG's symmetric gcn_norm in that case.
    """
    src, dst = edge_index[0], edge_index[1]
    a = jnp.zeros((n_pad, n_pad), jnp.float32).at[dst, src].add(1.0)
    idx = jnp.arange(num_nodes)
    diag = a[idx, idx]
    a = a.at[idx, idx].add(jnp.where(diag > 0.0, 0.0, 1.0))
    deg = a.sum(axis=1)
    dinv = jnp.where(jnp.arange(n_pad) < num_nodes,
                     jax.lax.rsqrt(jnp.maximum(deg, 1e-12)), 0.0)
    return (dinv[:, None] * a * dinv[None, :]).astype(jnp.bfloat16)


def gcn_forward(x, edge_index, params, *, force_streaming=False):
    """Full GCN forward; matmuls / ReLU / pooling run in Pallas kernels."""
    w1, b1, w2, b2, wl, bl = params
    n, f_in = x.shape
    assert n > 0
    hid = w1.shape[1]
    n_cls = wl.shape[1]

    n_pad = _round_up(n, LANE)
    f_pad = _round_up(f_in, LANE)
    h_pad = _round_up(hid, LANE)
    c_pad = _round_up(n_cls, LANE)

    vmem_limit, resident_budget = _vmem_caps()

    # TODO(synk): for large sparse graphs, replace dense A_hat with a block-sparse
    # stream (per-row-tile column-block lists via scalar prefetch); cache a_p
    # outside this function when the graph is static across calls.
    a_p = build_normalized_adjacency_padded(edge_index, n, n_pad)
    x_p = _pad2(x, n_pad, f_pad).astype(jnp.bfloat16)
    w1_p = _pad2(w1, f_pad, h_pad).astype(jnp.bfloat16)
    w2_p = _pad2(w2, h_pad, h_pad).astype(jnp.bfloat16)
    b1_p = _pad2(b1.reshape(1, -1).astype(jnp.float32), 1, h_pad)
    b2_p = _pad2(b2.reshape(1, -1).astype(jnp.float32), 1, h_pad)

    fused_bytes = 2 * n_pad * n_pad + n_pad * (2 * f_pad + 16 * h_pad) + (2 << 20)
    if not force_streaming and fused_bytes <= resident_budget:
        # Resident-A fused path: A read from HBM exactly once, one kernel launch.
        wl_p = _pad2(wl.astype(jnp.float32), h_pad, c_pad)
        bl_p = _pad2(bl.reshape(1, -1).astype(jnp.float32), 1, c_pad)
        y = _fused_forward(a_p, x_p, w1_p, b1_p, w2_p, b2_p, wl_p, bl_p,
                           n, vmem_limit)
        return y[0, :n_cls]

    # Streaming path: per-layer tiled aggregation with fused projection.
    # TODO(synk): if n_pad is so large that the resident X/H1 (n_pad x 128 bf16)
    # block no longer fits VMEM, stream it in K tiles as well.
    tm = _pick_tile(n_pad, (512, 256, 128))
    tk = _pick_tile(n_pad, (2048, 1024, 512, 256, 128))

    # GCNConv 1: relu(A_hat @ (x @ W1) + b1)
    h1 = _agg_layer(a_p, x_p, w1_p, b1_p, tm, tk, relu=True,
                    vmem_limit=vmem_limit)                       # [Np, Hp] bf16

    # GCNConv 2 fused with global-mean-pool partial sums (H2 stays in VMEM)
    psum = _agg_pool_layer(a_p, h1, w2_p, b2_p, tm, tk, n,
                           vmem_limit=vmem_limit)                # [NI*8, Hp] f32

    # Head is a single 1-row matmul -> plain JAX (cheaper than a launch).
    ni = psum.shape[0] // 8
    pooled = psum.reshape(ni, 8, h_pad)[:, 0, :].sum(axis=0, keepdims=True) / float(n)
    y = pooled[:, :hid] @ wl.astype(jnp.float32) + bl.astype(jnp.float32)
    return y[0, :n_cls]


# ---------------------------------------------------------------------------
# Params + reference
# ---------------------------------------------------------------------------
def init_params(key, num_node_features, hidden_channels, num_classes=10):
    k1, k2, k3 = jax.random.split(key, 3)

    def glorot(k, fan_in, fan_out):
        lim = jnp.sqrt(6.0 / (fan_in + fan_out))
        return jax.random.uniform(k, (fan_in, fan_out), jnp.float32, -lim, lim)

    w1 = glorot(k1, num_node_features, hidden_channels)
    b1 = jnp.zeros((hidden_channels,), jnp.float32)
    w2 = glorot(k2, hidden_channels, hidden_channels)
    b2 = jnp.zeros((hidden_channels,), jnp.float32)
    wl = glorot(k3, hidden_channels, num_classes)   # stored as [hidden, 10]
    bl = jnp.zeros((num_classes,), jnp.float32)
    return (w1, b1, w2, b2, wl, bl)


def reference_forward(x, edge_index, params):
    n = x.shape[0]
    src, dst = edge_index[0], edge_index[1]
    a = jnp.zeros((n, n), jnp.float32).at[dst, src].add(1.0)
    diag = jnp.diagonal(a)
    a = a + jnp.diag(jnp.where(diag > 0.0, 0.0, 1.0))
    deg = a.sum(axis=1)
    dinv = jax.lax.rsqrt(jnp.maximum(deg, 1e-12))
    a_hat = dinv[:, None] * a * dinv[None, :]
    w1, b1, w2, b2, wl, bl = params
    h = jnp.maximum(a_hat @ (x @ w1) + b1, 0.0)
    h = a_hat @ (h @ w2) + b2
    p = h.mean(axis=0, keepdims=True)
    return (p @ wl + bl).reshape(-1)


def _ring_edges(n):
    src = jnp.arange(n, dtype=jnp.int32)
    dst = (src + 1) % n
    return jnp.concatenate(
        [jnp.stack([src, dst], axis=0), jnp.stack([dst, src], axis=0)], axis=1
    )  # [2, 2n], bidirectional


if __name__ == "__main__":
    F_IN = 4   # num_node_features
    HID = 8    # hidden_channels

    key = jax.random.PRNGKey(0)
    kx1, kx2, kp = jax.random.split(key, 3)
    params = init_params(kp, F_IN, HID)

    fwd = jax.jit(gcn_forward, static_argnames=("force_streaming",))

    # Case 1: tiny graph -> fused resident-A single-kernel path.
    N1 = 16
    x1 = jax.random.normal(kx1, (N1, F_IN), jnp.float32)
    ei1 = _ring_edges(N1)
    out1 = jax.block_until_ready(fwd(x1, ei1, params))
    ref1 = reference_forward(x1, ei1, params)
    assert out1.shape == (10,)
    assert jnp.allclose(out1, ref1, atol=2e-2, rtol=2e-2), (out1, ref1)

    # Case 2: larger graph forced through the streaming/tiled path
    # (multiple row tiles and reduction steps, partial-tile pooling mask).
    N2 = 300
    x2 = jax.random.normal(kx2, (N2, F_IN), jnp.float32)
    ei2 = _ring_edges(N2)
    out2 = jax.block_until_ready(fwd(x2, ei2, params, force_streaming=True))
    ref2 = reference_forward(x2, ei2, params)
    assert out2.shape == (10,)
    assert jnp.allclose(out2, ref2, atol=2e-2, rtol=2e-2), (out2, ref2)

    print("KERNEL_OK")
</pallas_src>

<mosaic_0001>
module attributes {stable_mosaic.version = 11 : i64} {
  func.func private @main(%arg0: i32) attributes {dimension_semantics = [#tpu.dimension_semantics<core_parallel>], iteration_bounds = array<i64: 2>, tpu.core_type = #tpu.core_type<sc_scalar_subcore>, window_params = []} {
    return
  }
}

module attributes {stable_mosaic.version = 11 : i64} {
  func.func private @main(%arg0: i32) attributes {dimension_semantics = [#tpu.dimension_semantics<core_parallel>], iteration_bounds = array<i64: 2>, tpu.core_type = #tpu.core_type<sc_scalar_subcore>, window_params = []} {
    return
  }
}

module attributes {stable_mosaic.version = 11 : i64} {
  func.func @fused_gcn_kernel(%arg0: memref<128x128xbf16, #tpu.memory_space<vmem>>, %arg1: memref<128x128xbf16, #tpu.memory_space<vmem>>, %arg2: memref<128x128xbf16, #tpu.memory_space<vmem>>, %arg3: memref<1x128xf32, #tpu.memory_space<vmem>>, %arg4: memref<128x128xbf16, #tpu.memory_space<vmem>>, %arg5: memref<1x128xf32, #tpu.memory_space<vmem>>, %arg6: memref<128x128xf32, #tpu.memory_space<vmem>>, %arg7: memref<1x128xf32, #tpu.memory_space<vmem>>, %arg8: memref<1x128xf32, #tpu.memory_space<vmem>>) attributes {dimension_semantics = [], scalar_prefetch = 0 : i64, scratch_operands = 0 : i64, tpu.core_type = #tpu.core_type<tc>} {
    %c0 = arith.constant 0 : index
    %c0_0 = arith.constant 0 : index
    %0 = vector.load %arg1[%c0, %c0_0] : memref<128x128xbf16, #tpu.memory_space<vmem>>, vector<128x128xbf16>
    %c0_1 = arith.constant 0 : index
    %c0_2 = arith.constant 0 : index
    %1 = vector.load %arg2[%c0_1, %c0_2] : memref<128x128xbf16, #tpu.memory_space<vmem>>, vector<128x128xbf16>
    %cst = arith.constant dense<0.000000e+00> : vector<128x128xf32>
    %2 = tpu.matmul %0, %1, %cst {dimension_numbers = #tpu.dot_dimension_numbers<[1], [0], [0], [1], [0, 0, 1, 1], [], []>} : vector<128x128xbf16>, vector<128x128xbf16>, vector<128x128xf32> -> vector<128x128xf32>
    %3 = arith.truncf %2 : vector<128x128xf32> to vector<128x128xbf16>
    %c0_3 = arith.constant 0 : index
    %c0_4 = arith.constant 0 : index
    %4 = vector.load %arg0[%c0_3, %c0_4] : memref<128x128xbf16, #tpu.memory_space<vmem>>, vector<128x128xbf16>
    %cst_5 = arith.constant dense<0.000000e+00> : vector<128x128xf32>
    %5 = tpu.matmul %4, %3, %cst_5 {dimension_numbers = #tpu.dot_dimension_numbers<[1], [0], [0], [1], [0, 0, 1, 1], [], []>} : vector<128x128xbf16>, vector<128x128xbf16>, vector<128x128xf32> -> vector<128x128xf32>
    %c0_6 = arith.constant 0 : index
    %c0_7 = arith.constant 0 : index
    %6 = vector.load %arg3[%c0_6, %c0_7] : memref<1x128xf32, #tpu.memory_space<vmem>>, vector<1x128xf32>
    %7 = vector.broadcast %6 : vector<1x128xf32> to vector<128x128xf32>
    %8 = arith.addf %5, %7 : vector<128x128xf32>
    %cst_8 = arith.constant 0.000000e+00 : f32
    %9 = vector.broadcast %cst_8 : f32 to vector<128x128xf32>
    %10 = arith.maximumf %8, %9 : vector<128x128xf32>
    %11 = arith.truncf %10 : vector<128x128xf32> to vector<128x128xbf16>
    %c0_9 = arith.constant 0 : index
    %c0_10 = arith.constant 0 : index
    %12 = vector.load %arg4[%c0_9, %c0_10] : memref<128x128xbf16, #tpu.memory_space<vmem>>, vector<128x128xbf16>
    %cst_11 = arith.constant dense<0.000000e+00> : vector<128x128xf32>
    %13 = tpu.matmul %11, %12, %cst_11 {dimension_numbers = #tpu.dot_dimension_numbers<[1], [0], [0], [1], [0, 0, 1, 1], [], []>} : vector<128x128xbf16>, vector<128x128xbf16>, vector<128x128xf32> -> vector<128x128xf32>
    %14 = arith.truncf %13 : vector<128x128xf32> to vector<128x128xbf16>
    %c0_12 = arith.constant 0 : index
    %c0_13 = arith.constant 0 : index
    %15 = vector.load %arg0[%c0_12, %c0_13] : memref<128x128xbf16, #tpu.memory_space<vmem>>, vector<128x128xbf16>
    %cst_14 = arith.constant dense<0.000000e+00> : vector<128x128xf32>
    %16 = tpu.matmul %15, %14, %cst_14 {dimension_numbers = #tpu.dot_dimension_numbers<[1], [0], [0], [1], [0, 0, 1, 1], [], []>} : vector<128x128xbf16>, vector<128x128xbf16>, vector<128x128xf32> -> vector<128x128xf32>
    %cst_15 = arith.constant dense<0.000000e+00> : vector<128xf32>
    %17 = vector.multi_reduction <add>, %16, %cst_15 [0] : vector<128x128xf32> to vector<128xf32>
    %18 = vector.shape_cast %17 : vector<128xf32> to vector<1x128xf32>
    %cst_16 = arith.constant 6.250000e-02 : f32
    %19 = vector.broadcast %cst_16 : f32 to vector<1x128xf32>
    %20 = arith.mulf %18, %19 : vector<1x128xf32>
    %c0_17 = arith.constant 0 : index
    %c0_18 = arith.constant 0 : index
    %21 = vector.load %arg5[%c0_17, %c0_18] : memref<1x128xf32, #tpu.memory_space<vmem>>, vector<1x128xf32>
    %22 = arith.addf %20, %21 : vector<1x128xf32>
    %c0_19 = arith.constant 0 : index
    %c0_20 = arith.constant 0 : index
    %23 = vector.load %arg6[%c0_19, %c0_20] : memref<128x128xf32, #tpu.memory_space<vmem>>, vector<128x128xf32>
    %cst_21 = arith.constant dense<0.000000e+00> : vector<1x128xf32>
    %24 = tpu.matmul %22, %23, %cst_21 {dimension_numbers = #tpu.dot_dimension_numbers<[1], [0], [0], [1], [0, 0, 1, 1], [], []>} : vector<1x128xf32>, vector<128x128xf32>, vector<1x128xf32> -> vector<1x128xf32>
    %c0_22 = arith.constant 0 : index
    %c0_23 = arith.constant 0 : index
    %25 = vector.load %arg7[%c0_22, %c0_23] : memref<1x128xf32, #tpu.memory_space<vmem>>, vector<1x128xf32>
    %26 = arith.addf %24, %25 : vector<1x128xf32>
    %c0_24 = arith.constant 0 : index
    %c0_25 = arith.constant 0 : index
    %27 = vector.load %arg8[%c0_24, %c0_25] : memref<1x128xf32, #tpu.memory_space<vmem>>, vector<1x128xf32>
    tpu.vector_store %arg8[%c0_24, %c0_25], %26 {strides = array<i32>} : memref<1x128xf32, #tpu.memory_space<vmem>>, vector<1x128xf32>,
    return
  }
}

</mosaic_0001>

<bundles_post_ra>
// kernel: gcn_forward.1
= control target key start
LH: loop header
LB: loop body
LE: loop exit
PB: predicated region body
PF: predicated region fallthrough
CT: control target
= control target key end

     0   :  { %vm1174_vm0 = vmmov 0   ;;  %s1409_s2 = inlined_call_operand.vmem [shape: bf16[128,128], index: 2, kind: input, shape index: {}]   ;;  %s1410_s1 = inlined_call_operand.vmem [shape: bf16[128,128], index: 1, kind: input, shape index: {}]   ;;  %s1411_s0 = inlined_call_operand.vmem [shape: bf16[128,128], index: 0, kind: input, shape index: {}]   ;;  %s1412_s4 = inlined_call_operand.vmem [shape: bf16[128,128], index: 4, kind: input, shape index: {}]   ;;  %s1413_s3 = inlined_call_operand.vmem [shape: f32[1,128], index: 3, kind: input, shape index: {}]   ;;  %s1414_s6 = inlined_call_operand.vmem [shape: f32[128,128], index: 6, kind: input, shape index: {}]   ;;  %s1415_s5 = inlined_call_operand.vmem [shape: f32[1,128], index: 5, kind: input, shape index: {}]   ;;  %s1416_s7 = inlined_call_operand.vmem [shape: f32[1,128], index: 7, kind: input, shape index: {}]   ;;  %s1417_s8 = inlined_call_operand.vmem [shape: f32[1,128], index: 8, kind: output, shape index: {}]  }
   0x1   :  { %v1141_v0 = vld [vmem:[%s1409_s2] sm:$0xff]   ;;  %v1142_v1 = vld [vmem:[%s1409_s2 + $0x8] sm:$0xff]   ;;  %v1143_v2 = vld [vmem:[%s1409_s2 + $0x10] sm:$0xff]  }
   0x2   :  { %951 = vmatprep.subr.bf16.mxu0 %v1141_v0  ;;  %v1144_v3 = vld [vmem:[%s1409_s2 + $0x18] sm:$0xff]   ;;  %v1149_v4 = vld [vmem:[%s1410_s1] sm:$0xff]   ;;  %v1146_v6 = vld [vmem:[%s1409_s2 + $0x28] sm:$0xff]  }
   0x3   :  { %952 = vmatpush3.bf16.msra.mxu0 %v1141_v0  ;;  %967 = vmatprep.mubr.bf16.mxu0 %v1149_v4  ;;  %v1145_v5 = vld [vmem:[%s1409_s2 + $0x20] sm:$0xff]   ;;  %v1147_v7 = vld [vmem:[%s1409_s2 + $0x30] sm:$0xff]   ;;  %v1148_v8 = vld [vmem:[%s1409_s2 + $0x38] sm:$0xff]  }
   0x4   :  { %953 = vmatprep.subr.bf16.mxu0 %v1142_v1  ;;  %v1150_v9 = vld [vmem:[%s1410_s1 + $0x8] sm:$0xff]   ;;  %v1151_v10 = vld [vmem:[%s1410_s1 + $0x10] sm:$0xff]   ;;  %v1152_v11 = vld [vmem:[%s1410_s1 + $0x18] sm:$0xff]  }
   0x5   :  { %v1153_v12 = vld [vmem:[%s1410_s1 + $0x20] sm:$0xff]   ;;  %v1154_v13 = vld [vmem:[%s1410_s1 + $0x28] sm:$0xff]   ;;  %v1155_v14 = vld [vmem:[%s1410_s1 + $0x30] sm:$0xff]  }
   0x6   :  { %v1156_v15 = vld [vmem:[%s1410_s1 + $0x38] sm:$0xff]   ;;  %v1272_v16 = vld [vmem:[%s1411_s0] sm:$0xff]   ;;  %v1166_v18 = vld [vmem:[%s1412_s4 + $0x8] sm:$0xff]  }
   0x7   :  { %954 = vmatpush3.bf16.msra.mxu0 %v1142_v1  ;;  %999 = vmatprep.mubr.bf16.mxu1 %v1272_v16  ;;  %v1165_v17 = vld [vmem:[%s1412_s4] sm:$0xff]   ;;  %v1167_v19 = vld [vmem:[%s1412_s4 + $0x10] sm:$0xff]   ;;  %v1168_v20 = vld [vmem:[%s1412_s4 + $0x18] sm:$0xff]  }
   0x8   :  { %955 = vmatprep.subr.bf16.mxu0 %v1143_v2  ;;  %v1169_v21 = vld [vmem:[%s1412_s4 + $0x20] sm:$0xff]   ;;  %v1170_v22 = vld [vmem:[%s1412_s4 + $0x28] sm:$0xff]   ;;  %v1301_v48 = vld [vmem:[%s1411_s0 + $0x10] sm:$0xff]  }
   0x9   :  { %v1296_v47 = vld [vmem:[%s1411_s0 + $0x8] sm:$0xff]   ;;  %v1308_v49 = vld [vmem:[%s1411_s0 + $0x18] sm:$0xff]   ;;  %v1313_v50 = vld [vmem:[%s1411_s0 + $0x20] sm:$0xff]  }
   0xa   :  { %v1320_v51 = vld [vmem:[%s1411_s0 + $0x28] sm:$0xff]   ;;  %v1325_v52 = vld [vmem:[%s1411_s0 + $0x30] sm:$0xff]   ;;  %v1332_v53 = vld [vmem:[%s1411_s0 + $0x38] sm:$0xff]  }
   0xb   :  { %956 = vmatpush3.bf16.msra.mxu0 %v1143_v2  ;;  %v1171_v54 = vld [vmem:[%s1412_s4 + $0x30] sm:$0xff]   ;;  %v1172_v55 = vld [vmem:[%s1412_s4 + $0x38] sm:$0xff]   ;;  %v853_v56 = vld [vmem:[%s1413_s3] ss:$0 sm:$0xff] }
   0xc   :  { %957 = vmatprep.subr.bf16.mxu0 %v1144_v3 }
   0xf   :  { %958 = vmatpush3.bf16.msra.mxu0 %v1144_v3 }
  0x10   :  { %959 = vmatprep.subr.bf16.mxu0 %v1145_v5 }
  0x13   :  { %960 = vmatpush3.bf16.msra.mxu0 %v1145_v5 }
  0x14   :  { %961 = vmatprep.subr.bf16.mxu0 %v1146_v6 }
  0x17   :  { %962 = vmatpush3.bf16.msra.mxu0 %v1146_v6 }
  0x18   :  { %963 = vmatprep.subr.bf16.mxu0 %v1147_v7 }
  0x1b   :  { %964 = vmatpush3.bf16.msra.mxu0 %v1147_v7 }
  0x1c   :  { %965 = vmatprep.subr.bf16.mxu0 %v1148_v8 }
  0x1f   :  { %966 = vmatpush3.bf16.msra.mxu0 %v1148_v8 }
  0x20   :  { %1015 = vmatprep.subr.bf16.mxu0 %v1165_v17 }
  0x22   :  { %968 = vmatmul.mubr.bf16.vlgmr.msra.gmra.mrb[0].mxu0 %v1150_v9 }
  0x23   :  { %971 = vmatprep.mubr.bf16.mxu0 %v1151_v10  ;;  %1016 = vmatpush3.bf16.msra.mxu0 %v1165_v17 }
  0x24   :  { %1017 = vmatprep.subr.bf16.mxu0 %v1166_v18 }
  0x27   :  { %1018 = vmatpush3.bf16.msra.mxu0 %v1166_v18 }
  0x28   :  { %1019 = vmatprep.subr.bf16.mxu0 %v1167_v19 }
  0x2a   :  { %972 = vmatmul.mubr.bf16.gmra.mrb[4].mxu0 %v1152_v11 }
  0x2b   :  { %975 = vmatprep.mubr.bf16.mxu0 %v1153_v12  ;;  %1020 = vmatpush3.bf16.msra.mxu0 %v1167_v19 }
  0x2c   :  { %1021 = vmatprep.subr.bf16.mxu0 %v1168_v20 }
  0x2f   :  { %1022 = vmatpush3.bf16.msra.mxu0 %v1168_v20 }
  0x30   :  { %1023 = vmatprep.subr.bf16.mxu0 %v1169_v21 }
  0x32   :  { %976 = vmatmul.mubr.bf16.gmra.mrb[8].mxu0 %v1154_v13 }
  0x33   :  { %979 = vmatprep.mubr.bf16.mxu0 %v1155_v14  ;;  %1024 = vmatpush3.bf16.msra.mxu0 %v1169_v21 }
  0x34   :  { %1025 = vmatprep.subr.bf16.mxu0 %v1170_v22 }
  0x37   :  { %1026 = vmatpush3.bf16.msra.mxu0 %v1170_v22 }
  0x38   :  { %1027 = vmatprep.subr.bf16.mxu0 %v1171_v54 }
  0x3a   :  { %980 = vmatmul.mubr.bf16.gmra.mrb[12].mxu0 %v1156_v15 }
  0x3b   :  { %1028 = vmatpush3.bf16.msra.mxu0 %v1171_v54 }
  0x3c   :  { %1029 = vmatprep.subr.bf16.mxu0 %v1172_v55 }
  0x3f   :  { %1030 = vmatpush3.bf16.msra.mxu0 %v1172_v55 }
  0xf5   :  { %v969_v23 = vpop.f32.mrb[0].mxu0 }
  0xf6   :  { %v192_v24 = vpop.f32.mrb[1].mxu0 }
  0xf7   :  { %v970_v25 = vpop.f32.mrb[2].mxu0 }
  0xf8   :  { %v256_v26 = vpack.c.bf16 %v970_v25, %v969_v23  ;;  %v195_v27 = vpop.f32.mrb[3].mxu0 }
  0xf9   :  { %v255_v28 = vpack.c.bf16 %v195_v27, %v192_v24 }
  0xfb   :  { %983 = vmatprep.subr.bf16.mxu1 %v255_v28 }
  0xfc   :  { %984 = vmatpush3.bf16.msra.mxu1 %v255_v28 }
  0xfd   :  { %v973_v29 = vpop.f32.mrb[4].mxu0  ;;  %985 = vmatprep.subr.bf16.mxu1 %v256_v26 }
  0xfe   :  { %v208_v30 = vpop.f32.mrb[5].mxu0 }
  0xff   :  { %v974_v31 = vpop.f32.mrb[6].mxu0 }
 0x100   :  { %v258_v32 = vpack.c.bf16 %v974_v31, %v973_v29  ;;  %v211_v33 = vpop.f32.mrb[7].mxu0  ;;  %986 = vmatpush3.bf16.msra.mxu1 %v256_v26 }
 0x101   :  { %v257_v34 = vpack.c.bf16 %v211_v33, %v208_v30 }
 0x103   :  { %987 = vmatprep.subr.bf16.mxu1 %v257_v34 }
 0x104   :  { %988 = vmatpush3.bf16.msra.mxu1 %v257_v34 }
 0x105   :  { %v977_v35 = vpop.f32.mrb[8].mxu0  ;;  %989 = vmatprep.subr.bf16.mxu1 %v258_v32 }
 0x106   :  { %v224_v36 = vpop.f32.mrb[9].mxu0 }
 0x107   :  { %v978_v37 = vpop.f32.mrb[10].mxu0 }
 0x108   :  { %v260_v38 = vpack.c.bf16 %v978_v37, %v977_v35  ;;  %v227_v39 = vpop.f32.mrb[11].mxu0  ;;  %990 = vmatpush3.bf16.msra.mxu1 %v258_v32 }
 0x109   :  { %v259_v40 = vpack.c.bf16 %v227_v39, %v224_v36 }
 0x10b   :  { %991 = vmatprep.subr.bf16.mxu1 %v259_v40 }
 0x10c   :  { %992 = vmatpush3.bf16.msra.mxu1 %v259_v40 }
 0x10d   :  { %v981_v41 = vpop.f32.mrb[12].mxu0  ;;  %993 = vmatprep.subr.bf16.mxu1 %v260_v38 }
 0x10e   :  { %v240_v42 = vpop.f32.mrb[13].mxu0 }
 0x10f   :  { %v982_v43 = vpop.f32.mrb[14].mxu0 }
 0x110   :  { %v262_v44 = vpack.c.bf16 %v982_v43, %v981_v41  ;;  %v243_v45 = vpop.f32.mrb[15].mxu0  ;;  %994 = vmatpush3.bf16.msra.mxu1 %v260_v38 }
 0x111   :  { %v261_v46 = vpack.c.bf16 %v243_v45, %v240_v42 }
 0x113   :  { %995 = vmatprep.subr.bf16.mxu1 %v261_v46 }
 0x114   :  { %996 = vmatpush3.bf16.msra.mxu1 %v261_v46 }
 0x115   :  { %997 = vmatprep.subr.bf16.mxu1 %v262_v44 }
 0x118   :  { %998 = vmatpush3.bf16.msra.mxu1 %v262_v44 }
 0x11b   :  { %1000 = vmatmul.mubr.bf16.vlgmr.msra.gmra.mrb[0].mxu1 %v1296_v47 }
 0x11c   :  { %1003 = vmatprep.mubr.bf16.mxu1 %v1301_v48 }
 0x123   :  { %1004 = vmatmul.mubr.bf16.gmra.mrb[4].mxu1 %v1308_v49 }
 0x124   :  { %1007 = vmatprep.mubr.bf16.mxu1 %v1313_v50 }
 0x12b   :  { %1008 = vmatmul.mubr.bf16.gmra.mrb[8].mxu1 %v1320_v51 }
 0x12c   :  { %1011 = vmatprep.mubr.bf16.mxu1 %v1325_v52 }
 0x133   :  { %1012 = vmatmul.mubr.bf16.gmra.mrb[12].mxu1 %v1332_v53 }
 0x134   :  { %1063 = vmatprep.mubr.bf16.mxu1 %v1272_v16 }
 0x1ee   :  { %v1001_v57 = vpop.f32.mrb[0].mxu1 }
 0x1ef   :  { %v377_v58 = vadd.f32 %v1001_v57, %v853_v56  ;;  %v368_v59 = vpop.f32.mrb[1].mxu1 }
 0x1f0   :  { %v369_v60 = vadd.f32 %v853_v56, %v368_v59  ;;  %v1002_v61 = vpop.f32.mrb[2].mxu1 }
 0x1f1   :  { %v380_v62 = vadd.f32 %v1002_v61, %v853_v56  ;;  %v371_v63 = vpop.f32.mrb[3].mxu1  ;;  %v433_v1 = vmax.f32 %v377_v58, 0.0 }
 0x1f2   :  { %v372_v0 = vadd.f32 %v853_v56, %v371_v63  ;;  %v431_v3 = vmax.f32 %v369_v60, 0.0 }
 0x1f3   :  { %v434_v2 = vmax.f32 %v380_v62, 0.0 }
 0x1f4   :  { %v432_v4 = vmax.f32 %v372_v0, 0.0 }
 0x1f5   :  { %v448_v5 = vpack.c.bf16 %v434_v2, %v433_v1 }
 0x1f6   :  { %v447_v6 = vpack.c.bf16 %v432_v4, %v431_v3  ;;  %v1005_v7 = vpop.f32.mrb[4].mxu1 }
 0x1f7   :  { %v393_v8 = vadd.f32 %v1005_v7, %v853_v56  ;;  %v384_v9 = vpop.f32.mrb[5].mxu1 }
 0x1f8   :  { %v385_v10 = vadd.f32 %v853_v56, %v384_v9  ;;  %v1006_v11 = vpop.f32.mrb[6].mxu1  ;;  %1031 = vmatprep.mubr.bf16.mxu0 %v447_v6 }
 0x1f9   :  { %v396_v12 = vadd.f32 %v1006_v11, %v853_v56  ;;  %v387_v13 = vpop.f32.mrb[7].mxu1  ;;  %1032 = vmatmul.mubr.bf16.vlgmr.msra.gmra.mrb[16].mxu0 %v448_v5  ;;  %v437_v15 = vmax.f32 %v393_v8, 0.0 }
 0x1fa   :  { %v388_v14 = vadd.f32 %v853_v56, %v387_v13  ;;  %v435_v17 = vmax.f32 %v385_v10, 0.0 }
 0x1fb   :  { %v438_v16 = vmax.f32 %v396_v12, 0.0 }
 0x1fc   :  { %v436_v18 = vmax.f32 %v388_v14, 0.0 }
 0x1fd   :  { %v450_v19 = vpack.c.bf16 %v438_v16, %v437_v15  ;;  %v745_v16 = vld [vmem:[%s1414_s6] sm:$0xff] }
 0x1fe   :  { %v449_v20 = vpack.c.bf16 %v436_v18, %v435_v17  ;;  %v1009_v21 = vpop.f32.mrb[8].mxu1 }
 0x1ff   :  { %v409_v22 = vadd.f32 %v1009_v21, %v853_v56  ;;  %v400_v23 = vpop.f32.mrb[9].mxu1 }
 0x200   :  { %v401_v24 = vadd.f32 %v853_v56, %v400_v23  ;;  %v1010_v25 = vpop.f32.mrb[10].mxu1  ;;  %1035 = vmatprep.mubr.bf16.mxu0 %v449_v20  ;;  %v752_v20 = vld [vmem:[%s1414_s6 + $0x38] sm:$0xff]  ;;  %v754_v23 = vld [vmem:[%s1414_s6 + $0x48] sm:$0xff] }
 0x201   :  { %v412_v26 = vadd.f32 %v1010_v25, %v853_v56  ;;  %v403_v27 = vpop.f32.mrb[11].mxu1  ;;  %1036 = vmatmul.mubr.bf16.gmra.mrb[20].mxu0 %v450_v19  ;;  %v441_v29 = vmax.f32 %v409_v22, 0.0  ;;  %v751_v19 = vld [vmem:[%s1414_s6 + $0x30] sm:$0xff]  ;;  %v753_v22 = vld [vmem:[%s1414_s6 + $0x40] sm:$0xff] }
 0x202   :  { %v404_v28 = vadd.f32 %v853_v56, %v403_v27  ;;  %v439_v31 = vmax.f32 %v401_v24, 0.0  ;;  %v1124_v21 = vpack.c.bf16 %v752_v20, %v751_v19  ;;  %v1127_v24 = vpack.c.bf16 %v754_v23, %v753_v22  ;;  %v755_v25 = vld [vmem:[%s1414_s6 + $0x50] sm:$0xff] }
 0x203   :  { %v442_v30 = vmax.f32 %v412_v26, 0.0  ;;  %v756_v26 = vld [vmem:[%s1414_s6 + $0x58] sm:$0xff] }
 0x204   :  { %v440_v32 = vmax.f32 %v404_v28, 0.0  ;;  %v1130_v27 = vpack.c.bf16 %v756_v26, %v755_v25  ;;  %v757_v28 = vld [vmem:[%s1414_s6 + $0x60] sm:$0xff] }
 0x205   :  { %v452_v33 = vpack.c.bf16 %v442_v30, %v441_v29  ;;  %v758_v29 = vld [vmem:[%s1414_s6 + $0x68] sm:$0xff] }
 0x206   :  { %v451_v34 = vpack.c.bf16 %v440_v32, %v439_v31  ;;  %v1013_v35 = vpop.f32.mrb[12].mxu1  ;;  %v1133_v30 = vpack.c.bf16 %v758_v29, %v757_v28  ;;  %v759_v31 = vld [vmem:[%s1414_s6 + $0x70] sm:$0xff]  ;;  %v760_v32 = vld [vmem:[%s1414_s6 + $0x78] sm:$0xff] }
 0x207   :  { %v425_v36 = vadd.f32 %v1013_v35, %v853_v56  ;;  %v416_v37 = vpop.f32.mrb[13].mxu1 }
 0x208   :  { %v417_v38 = vadd.f32 %v853_v56, %v416_v37  ;;  %v1014_v39 = vpop.f32.mrb[14].mxu1  ;;  %1039 = vmatprep.mubr.bf16.mxu0 %v451_v34  ;;  %v1175_v34 = vmov 0.0  }
 0x209   :  { %v428_v40 = vadd.f32 %v1014_v39, %v853_v56  ;;  %v419_v41 = vpop.f32.mrb[15].mxu1  ;;  %1040 = vmatmul.mubr.bf16.gmra.mrb[24].mxu0 %v452_v33  ;;  %v445_v43 = vmax.f32 %v425_v36, 0.0  ;;  %v1136_v33 = vpack.c.bf16 %v760_v32, %v759_v31 }
 0x20a   :  { %v420_v42 = vadd.f32 %v853_v56, %v419_v41  ;;  %v443_v45 = vmax.f32 %v417_v38, 0.0 }
 0x20b   :  { %v446_v44 = vmax.f32 %v428_v40, 0.0 }
 0x20c   :  { %v444_v46 = vmax.f32 %v420_v42, 0.0 }
 0x20d   :  { %v454_v54 = vpack.c.bf16 %v446_v44, %v445_v43 }
 0x20e   :  { %v453_v55 = vpack.c.bf16 %v444_v46, %v443_v45 }
 0x210   :  { %1043 = vmatprep.mubr.bf16.mxu0 %v453_v55 }
 0x211   :  { %1044 = vmatmul.mubr.bf16.gmra.mrb[28].mxu0 %v454_v54 }
 0x212   :  { %1111 = vmatprep.mubr.msk.f32.mxu0 %vm1174_vm0, %v1175_v34 }
 0x2cc   :  { %v1033_v57 = vpop.f32.mrb[16].mxu0 }
 0x2cd   :  { %v553_v58 = vpop.f32.mrb[17].mxu0 }
 0x2ce   :  { %v1034_v59 = vpop.f32.mrb[18].mxu0 }
 0x2cf   :  { %v617_v60 = vpack.c.bf16 %v1034_v59, %v1033_v57  ;;  %v556_v61 = vpop.f32.mrb[19].mxu0 }
 0x2d0   :  { %v616_v62 = vpack.c.bf16 %v556_v61, %v553_v58 }
 0x2d2   :  { %1047 = vmatprep.subr.bf16.mxu1 %v616_v62 }
 0x2d3   :  { %1048 = vmatpush3.bf16.msra.mxu1 %v616_v62 }
 0x2d4   :  { %v1037_v63 = vpop.f32.mrb[20].mxu0  ;;  %1049 = vmatprep.subr.bf16.mxu1 %v617_v60 }
 0x2d5   :  { %v569_v0 = vpop.f32.mrb[21].mxu0 }
 0x2d6   :  { %v1038_v56 = vpop.f32.mrb[22].mxu0 }
 0x2d7   :  { %v619_v1 = vpack.c.bf16 %v1038_v56, %v1037_v63  ;;  %v572_v2 = vpop.f32.mrb[23].mxu0  ;;  %1050 = vmatpush3.bf16.msra.mxu1 %v617_v60 }
 0x2d8   :  { %v618_v3 = vpack.c.bf16 %v572_v2, %v569_v0 }
 0x2da   :  { %1051 = vmatprep.subr.bf16.mxu1 %v618_v3 }
 0x2db   :  { %1052 = vmatpush3.bf16.msra.mxu1 %v618_v3 }
 0x2dc   :  { %v1041_v4 = vpop.f32.mrb[24].mxu0  ;;  %1053 = vmatprep.subr.bf16.mxu1 %v619_v1 }
 0x2dd   :  { %v585_v5 = vpop.f32.mrb[25].mxu0 }
 0x2de   :  { %v1042_v6 = vpop.f32.mrb[26].mxu0 }
 0x2df   :  { %v621_v7 = vpack.c.bf16 %v1042_v6, %v1041_v4  ;;  %v588_v8 = vpop.f32.mrb[27].mxu0  ;;  %1054 = vmatpush3.bf16.msra.mxu1 %v619_v1 }
 0x2e0   :  { %v620_v9 = vpack.c.bf16 %v588_v8, %v585_v5 }
 0x2e2   :  { %1055 = vmatprep.subr.bf16.mxu1 %v620_v9 }
 0x2e3   :  { %1056 = vmatpush3.bf16.msra.mxu1 %v620_v9 }
 0x2e4   :  { %v1045_v10 = vpop.f32.mrb[28].mxu0  ;;  %1057 = vmatprep.subr.bf16.mxu1 %v621_v7 }
 0x2e5   :  { %v601_v11 = vpop.f32.mrb[29].mxu0 }
 0x2e6   :  { %v1046_v12 = vpop.f32.mrb[30].mxu0 }
 0x2e7   :  { %v623_v13 = vpack.c.bf16 %v1046_v12, %v1045_v10  ;;  %v604_v14 = vpop.f32.mrb[31].mxu0  ;;  %1058 = vmatpush3.bf16.msra.mxu1 %v621_v7 }
 0x2e8   :  { %v622_v15 = vpack.c.bf16 %v604_v14, %v601_v11 }
 0x2ea   :  { %1059 = vmatprep.subr.bf16.mxu1 %v622_v15 }
 0x2eb   :  { %1060 = vmatpush3.bf16.msra.mxu1 %v622_v15  ;;  %v743_v15 = vld [vmem:[%s1415_s5] sm:$0x1] }
 0x2ec   :  { %1061 = vmatprep.subr.bf16.mxu1 %v623_v13 }
 0x2ef   :  { %1062 = vmatpush3.bf16.msra.mxu1 %v623_v13 }
 0x2f2   :  { %1064 = vmatmul.mubr.bf16.vlgmr.msra.gmra.mrb[16].mxu1 %v1296_v47  ;;  %v746_v47 = vld [vmem:[%s1414_s6 + $0x8] sm:$0xff] }
 0x2f3   :  { %1067 = vmatprep.mubr.bf16.mxu1 %v1301_v48  ;;  %v1115_v17 = vpack.c.bf16 %v746_v47, %v745_v16  ;;  %v1173_v48 = vmov 0.0|0.0  }
 0x2f4   :  { %1114 = vmatprep.subr.bf16.mxu0 %v1173_v48 }
 0x2f5   :  { %1116 = vmatpush3.bf16.msra.mxu0 %v1115_v17  ;;  %v761_v17 = vld [vmem:[%s1416_s7] sm:$0x1] }
 0x2f6   :  { %1117 = vmatprep.subr.bf16.mxu0 %v1173_v48 }
 0x2fa   :  { %1068 = vmatmul.mubr.bf16.gmra.mrb[20].mxu1 %v1308_v49  ;;  %v747_v49 = vld [vmem:[%s1414_s6 + $0x10] sm:$0xff] }
 0x2fb   :  { %1071 = vmatprep.mubr.bf16.mxu1 %v1313_v50  ;;  %v748_v50 = vld [vmem:[%s1414_s6 + $0x18] sm:$0xff] }
 0x302   :  { %1072 = vmatmul.mubr.bf16.gmra.mrb[24].mxu1 %v1320_v51  ;;  %v1118_v51 = vpack.c.bf16 %v748_v50, %v747_v49 }
 0x303   :  { %1075 = vmatprep.mubr.bf16.mxu1 %v1325_v52  ;;  %v749_v52 = vld [vmem:[%s1414_s6 + $0x20] sm:$0xff] }
 0x304   :  { %1119 = vmatpush3.bf16.msra.mxu0 %v1118_v51 }
 0x305   :  { %1120 = vmatprep.subr.bf16.mxu0 %v1173_v48 }
 0x30a   :  { %1076 = vmatmul.mubr.bf16.gmra.mrb[28].mxu1 %v1332_v53  ;;  %v750_v53 = vld [vmem:[%s1414_s6 + $0x28] sm:$0xff] }
 0x30b   :  { %v1121_v18 = vpack.c.bf16 %v750_v53, %v749_v52 }
 0x30d   :  { %1122 = vmatpush3.bf16.msra.mxu0 %v1121_v18 }
 0x30e   :  { %1123 = vmatprep.subr.bf16.mxu0 %v1173_v48 }
 0x311   :  { %1125 = vmatpush3.bf16.msra.mxu0 %v1124_v21 }
 0x312   :  { %1126 = vmatprep.subr.bf16.mxu0 %v1173_v48 }
 0x315   :  { %1128 = vmatpush3.bf16.msra.mxu0 %v1127_v24 }
 0x316   :  { %1129 = vmatprep.subr.bf16.mxu0 %v1173_v48 }
 0x319   :  { %1131 = vmatpush3.bf16.msra.mxu0 %v1130_v27 }
 0x31a   :  { %1132 = vmatprep.subr.bf16.mxu0 %v1173_v48 }
 0x31d   :  { %1134 = vmatpush3.bf16.msra.mxu0 %v1133_v30 }
 0x31e   :  { %1135 = vmatprep.subr.bf16.mxu0 %v1173_v48 }
 0x321   :  { %1137 = vmatpush3.bf16.msra.mxu0 %v1136_v33 }
 0x3c5   :  { %v1065_v35 = vpop.f32.mrb[16].mxu1 }
 0x3c6   :  { %v658_v36 = vpop.f32.mrb[17].mxu1 }
 0x3c7   :  { %v1066_v37 = vpop.f32.mrb[18].mxu1 }
 0x3c8   :  { %v661_v38 = vpop.f32.mrb[19].mxu1 }
 0x3c9   :  { %v721_v39 = vadd.f32 %v661_v38, %v658_v36 }
 0x3cb   :  { %v722_v40 = vadd.f32 %v1065_v35, %v721_v39 }
 0x3cd   :  { %v1069_v41 = vpop.f32.mrb[20].mxu1  ;;  %v723_v42 = vadd.f32 %v1066_v37, %v722_v40 }
 0x3ce   :  { %v674_v43 = vpop.f32.mrb[21].mxu1 }
 0x3cf   :  { %v724_v44 = vadd.f32 %v723_v42, %v674_v43  ;;  %v1070_v45 = vpop.f32.mrb[22].mxu1 }
 0x3d0   :  { %v677_v46 = vpop.f32.mrb[23].mxu1 }
 0x3d1   :  { %v725_v54 = vadd.f32 %v724_v44, %v677_v46 }
 0x3d3   :  { %v726_v55 = vadd.f32 %v1069_v41, %v725_v54 }
 0x3d5   :  { %v1073_v57 = vpop.f32.mrb[24].mxu1  ;;  %v727_v58 = vadd.f32 %v1070_v45, %v726_v55 }
 0x3d6   :  { %v690_v59 = vpop.f32.mrb[25].mxu1 }
 0x3d7   :  { %v728_v60 = vadd.f32 %v727_v58, %v690_v59  ;;  %v1074_v61 = vpop.f32.mrb[26].mxu1 }
 0x3d8   :  { %v693_v62 = vpop.f32.mrb[27].mxu1 }
 0x3d9   :  { %v729_v63 = vadd.f32 %v728_v60, %v693_v62 }
 0x3db   :  { %v730_v0 = vadd.f32 %v1073_v57, %v729_v63 }
 0x3dd   :  { %v1077_v56 = vpop.f32.mrb[28].mxu1  ;;  %v731_v1 = vadd.f32 %v1074_v61, %v730_v0 }
 0x3de   :  { %v706_v2 = vpop.f32.mrb[29].mxu1 }
 0x3df   :  { %v732_v3 = vadd.f32 %v731_v1, %v706_v2  ;;  %v1078_v4 = vpop.f32.mrb[30].mxu1 }
 0x3e0   :  { %v709_v5 = vpop.f32.mrb[31].mxu1 }
 0x3e1   :  { %v733_v6 = vadd.f32 %v732_v3, %v709_v5 }
 0x3e3   :  { %v734_v7 = vadd.f32 %v1077_v56, %v733_v6 }
 0x3e5   :  { %v735_v8 = vadd.f32 %v1078_v4, %v734_v7 }
 0x3e7   :  { %v736_v9 = vrot.slane %v735_v8, 4 }
 0x3e9   :  { %v737_v10 = vadd.f32 %v736_v9, %v735_v8 }
 0x3eb   :  { %v738_v11 = vrot.slane %v737_v10, 2 }
 0x3ed   :  { %v739_v12 = vadd.f32 %v738_v11, %v737_v10 }
 0x3ef   :  { %v740_v13 = vrot.slane %v739_v12, 1 }
 0x3f1   :  { %v741_v14 = vadd.f32 %v740_v13, %v739_v12 }
 0x3f3   :  { %v742_v16 = vmul.f32 0.0625, %v741_v14 }
 0x3f5   :  { %v744_v47 = vadd.f32 %v743_v15, %v742_v16 }
 0x3f7   :  { %1112 = vmatmul.mubr.f32.vlgmr.msra.gmra.mrb[32].mxu0 %v744_v47 }
 0x4ca   :  { %v828_v48 = vpop.f32.mrb[32].mxu0 }
 0x4cb   :  { %v829_v49 = vadd.f32 %v828_v48, %v761_v17  ;;  %v1113_v50 = vpop.f32.mrb[33].mxu0 }
 0x4cd   :  { %832 = vst [vmem:[%s1417_s8] sm:$0x1] %v829_v49 }

</bundles_post_ra>
